<compile_context>
chip_gen: v5e
topology: v5e:2x2
jax: 0.10.0
libtpu: 0.0.40
codegen_flags: <defaults>
</compile_context>

<pallas_src>
import functools

import jax
import jax.numpy as jnp
from jax import lax
from jax.experimental import pallas as pl
from jax.experimental.pallas import tpu as pltpu

_ROW_TILE = 128   # adjacency/output rows processed per grid step


def _row_tile(num_v):
    # Small graphs: a single full-dim tile (no partial blocks at all).
    # Large graphs: 128-row tiles; the last tile may be partial -- Pallas skips
    # the out-of-bounds writes and the garbage it reads there only ever feeds
    # rows whose writes are dropped.
    return num_v if num_v <= _ROW_TILE else _ROW_TILE


# ---------------------------------------------------------------------------
# Kernel 1 -- gc1:  h1 = relu(adj0 @ s1 + b1), with s1 = x @ W1 hoisted out.
# Each grid step streams one (TM, numV) bf16 slab of adj0 through VMEM
# (BlockSpec double-buffering overlaps DMA with compute); s1/b1 are tiny
# resident blocks.  The bf16 -> f32 upcast is exact for a 0/1 adjacency.
# ---------------------------------------------------------------------------
def _gc1_kernel(adj_ref, s1_ref, b1_ref, h1_ref):
    adj = adj_ref[...].astype(jnp.float32)                      # exact for 0/1
    h1 = jnp.dot(adj, s1_ref[...], preferred_element_type=jnp.float32) + b1_ref[...]
    h1_ref[...] = jnp.maximum(h1, 0.0)


# ---------------------------------------------------------------------------
# Kernel 2 -- gc2 with adj1 = softmax(h1 @ h1^T) fused in:
#   e1 = exp(g1_tile - rowmax);  h2 = relu((e1 @ s2) * 1/rowsum(e1) + b2)
# adj1 is never materialized; only one (TM, numV) gram slab is live.  h1 is
# passed pre-transposed (F_hid, numV) so Mosaic does no per-step transpose,
# and s2 = h1 @ W2 is precomputed outside the grid.
# ---------------------------------------------------------------------------
def _gc2_fused_kernel(h1_tile_ref, h1t_ref, s2_ref, b2_ref, h2_ref):
    g1 = jnp.dot(h1_tile_ref[...], h1t_ref[...],
                 preferred_element_type=jnp.float32)            # (TM, numV)
    m = jnp.max(g1, axis=-1, keepdims=True)
    e1 = jnp.exp(g1 - m)
    l = jnp.sum(e1, axis=-1, keepdims=True)
    num = jnp.dot(e1, s2_ref[...], preferred_element_type=jnp.float32)   # (TM, 1)
    h2 = num * pl.reciprocal(l) + b2_ref[...]
    h2_ref[...] = jnp.maximum(h2, 0.0)


# ---------------------------------------------------------------------------
# Kernel 3 -- final predAdj(h2, fin=1), tile-at-a-time from h2:
#   g2_tile = h2_col * h2_row   (VPU broadcast outer product, no K=1 MXU call)
#   zero the diagonal (per-tile iota offset by program_id), shift by the
#   analytic row-max upper bound h2_i * max(h2) (h2 >= 0, diag = 0, so it
#   dominates every entry; underflow only if h2 magnitudes were huge), then
#   normalize and write the (numV, numV) output exactly once.
# ---------------------------------------------------------------------------
def _pred_adj_fin_kernel(h2_col_ref, h2_row_ref, shift_ref, out_ref, *, tm):
    g2 = h2_col_ref[...] * h2_row_ref[...]          # (TM, 1) * (1, numV)
    row = tm * pl.program_id(0) + lax.broadcasted_iota(jnp.int32, g2.shape, 0)
    col = lax.broadcasted_iota(jnp.int32, g2.shape, 1)
    g2 = jnp.where(row == col, 0.0, g2)             # fin=1: zero diag before softmax
    e2 = jnp.exp(g2 - shift_ref[...])               # shift >= rowmax(g2), stable
    l = jnp.sum(e2, axis=-1, keepdims=True)
    out_ref[...] = e2 * pl.reciprocal(l)            # exact: rows sum to 1 (~1e-6)


def generator_ad(x, adj0, w1, b1, w2, b2):
    """GeneratorAD.forward given a pre-sampled Bernoulli adjacency adj0."""
    num_v, _ = x.shape
    f_hid = w1.shape[1]
    tm = _row_tile(num_v)
    n_tiles = pl.cdiv(num_v, tm)

    # adj0 is exactly 0/1 -> bf16 is lossless and halves its HBM footprint.
    # (Ideally the caller samples it in bf16 directly, as the test does.)
    if adj0.dtype != jnp.bfloat16:
        adj0 = adj0.astype(jnp.bfloat16)

    hp = lax.Precision.HIGHEST
    params = pltpu.CompilerParams(
        dimension_semantics=("parallel",),          # shards row tiles across TCs
        vmem_limit_bytes=64 * 1024 * 1024,          # v5e default scoped VMEM is 16 MiB
    )

    # ---- hoisted tiny matmul (per-tile invariant): s1 = x @ W1 ----
    s1 = jnp.dot(x, w1, precision=hp)               # (numV, F_hid)

    # ---- gc1: h1 = relu(adj0 @ s1 + b1) ----
    h1 = pl.pallas_call(
        _gc1_kernel,
        grid=(n_tiles,),
        out_shape=jax.ShapeDtypeStruct((num_v, f_hid), jnp.float32),
        in_specs=[
            pl.BlockSpec((tm, num_v), lambda i: (i, 0)),      # bf16 adj row slab
            pl.BlockSpec((num_v, f_hid), lambda i: (0, 0)),   # s1 resident
            pl.BlockSpec(b1.shape, lambda i: (0, 0)),
        ],
        out_specs=pl.BlockSpec((tm, f_hid), lambda i: (i, 0)),
        compiler_params=params,
    )(adj0, s1, b1)

    # ---- hoisted tiny ops: transpose of h1 (once) and s2 = h1 @ W2 ----
    h1_t = h1.T                                     # (F_hid, numV), O(numV*F_hid)
    s2 = jnp.dot(h1, w2, precision=hp)              # (numV, 1)

    # ---- gc2 with the adj1 softmax fused in (adj1 never materialized) ----
    h2 = pl.pallas_call(
        _gc2_fused_kernel,
        grid=(n_tiles,),
        out_shape=jax.ShapeDtypeStruct((num_v, 1), jnp.float32),
        in_specs=[
            pl.BlockSpec((tm, f_hid), lambda i: (i, 0)),      # row tile of h1
            pl.BlockSpec((f_hid, num_v), lambda i: (0, 0)),   # h1^T resident
            pl.BlockSpec((num_v, 1), lambda i: (0, 0)),       # s2 resident
            pl.BlockSpec(b2.shape, lambda i: (0, 0)),
        ],
        out_specs=pl.BlockSpec((tm, 1), lambda i: (i, 0)),
        compiler_params=params,
    )(h1, h1_t, s2, b2)

    # ---- final predAdj(h2, fin=1), tile-wise directly from h2 ----
    h2_row = h2.reshape(1, num_v)                   # layout plumbing, tiny
    shift = h2 * jnp.max(h2)                        # analytic per-row softmax shift

    out = pl.pallas_call(
        functools.partial(_pred_adj_fin_kernel, tm=tm),
        grid=(n_tiles,),
        out_shape=jax.ShapeDtypeStruct((num_v, num_v), jnp.float32),
        in_specs=[
            pl.BlockSpec((tm, 1), lambda i: (i, 0)),
            pl.BlockSpec((1, num_v), lambda i: (0, 0)),
            pl.BlockSpec((tm, 1), lambda i: (i, 0)),
        ],
        out_specs=pl.BlockSpec((tm, num_v), lambda i: (i, 0)),
        compiler_params=params,
    )(h2, h2_row, shift)

    return out


def _reference(x, adj0, w1, b1, w2, b2):
    """Pure-JAX reference of GeneratorAD.forward (HIGHEST matmul precision)."""
    hp = lax.Precision.HIGHEST
    adj0 = adj0.astype(jnp.float32)
    h1 = jax.nn.relu(jnp.dot(adj0, jnp.dot(x, w1, precision=hp), precision=hp) + b1)
    adj1 = jax.nn.softmax(jnp.dot(h1, h1.T, precision=hp), axis=-1)
    h2 = jax.nn.relu(jnp.dot(adj1, jnp.dot(h1, w2, precision=hp), precision=hp) + b2)
    g2 = jnp.dot(h2, h2.T, precision=hp)
    g2 = jnp.where(jnp.eye(g2.shape[0], dtype=bool), 0.0, g2)
    return jax.nn.softmax(g2, axis=-1)


if __name__ == "__main__":
    f_in, f_hid, f_out = 2, 5, 1  # GraphConvolution(2, 5) -> GraphConvolution(5, 1)

    def make_inputs(key, num_v, x_scale=1.0):
        k_x, k_adj, k_w1, k_b1, k_w2, k_b2 = jax.random.split(key, 6)
        x = x_scale * jax.random.normal(k_x, (num_v, f_in), dtype=jnp.float32)
        # Bernoulli(0.5) random adjacency, sampled directly in bf16 (exact 0/1)
        adj0 = jax.random.bernoulli(k_adj, 0.5, (num_v, num_v)).astype(jnp.bfloat16)

        def init(k, shape, fan_out):  # Kipf-style U(-1/sqrt(out), +1/sqrt(out))
            bound = 1.0 / jnp.sqrt(jnp.float32(fan_out))
            return jax.random.uniform(k, shape, jnp.float32, -bound, bound)

        return (x, adj0,
                init(k_w1, (f_in, f_hid), f_hid), init(k_b1, (1, f_hid), f_hid),
                init(k_w2, (f_hid, f_out), f_out), init(k_b2, (1, f_out), f_out))

    # --- case 1: spec-sized graph (numV = 8 -> single full-dim tile) ---
    args = make_inputs(jax.random.PRNGKey(0), 8)
    out = generator_ad(*args)
    jax.block_until_ready(out)
    ref = _reference(*args)
    assert out.shape == (8, 8) and out.dtype == jnp.float32
    # Final normalization is exact -> rows of the softmax sum to 1 tightly.
    assert bool(jnp.allclose(jnp.sum(out, axis=-1), 1.0, atol=1e-5))
    # Loose elementwise tolerance: softmax(h2 h2^T) is exponentially sensitive to
    # matmul rounding, so this is a structural check (masking / diagonal / tiling),
    # not a bit-exactness check.
    assert bool(jnp.allclose(out, ref, atol=5e-2, rtol=1e-1))

    # --- case 2: ragged multi-tile graph (numV = 200 -> 2 row tiles, 2nd partial) ---
    args2 = make_inputs(jax.random.PRNGKey(1), 200, x_scale=0.01)
    out2 = generator_ad(*args2)
    jax.block_until_ready(out2)
    ref2 = _reference(*args2)
    assert out2.shape == (200, 200)
    assert bool(jnp.all(jnp.isfinite(out2))) and bool(jnp.all(out2 >= 0.0))
    assert bool(jnp.allclose(jnp.sum(out2, axis=-1), 1.0, atol=1e-4))
    assert bool(jnp.allclose(out2, ref2, atol=2e-4, rtol=1e-1))

    print("KERNEL_OK")
</pallas_src>

<mosaic_0001>
module attributes {stable_mosaic.version = 11 : i64} {
  func.func @_gc1_kernel(%arg0: i32, %arg1: memref<8x8xbf16, #tpu.memory_space<vmem>>, %arg2: memref<8x5xf32, #tpu.memory_space<vmem>>, %arg3: memref<1x5xf32, #tpu.memory_space<vmem>>, %arg4: memref<8x5xf32, #tpu.memory_space<vmem>>) attributes {dimension_semantics = [#tpu.dimension_semantics<parallel>], iteration_bounds = array<i64: 1>, scalar_prefetch = 0 : i64, scratch_operands = 0 : i64, tpu.core_type = #tpu.core_type<tc>, window_params = [{transform_indices = @transform_0, window_bounds = array<i64: 8, 8>}, {pipeline_mode = #tpu.pipeline_mode<synchronous>, transform_indices = @transform_1, window_bounds = array<i64: 8, 5>}, {pipeline_mode = #tpu.pipeline_mode<synchronous>, transform_indices = @transform_2, window_bounds = array<i64: 1, 5>}, {transform_indices = @transform_3, window_bounds = array<i64: 8, 5>}]} {
    %c0 = arith.constant 0 : index
    %c0_0 = arith.constant 0 : index
    %0 = vector.load %arg1[%c0, %c0_0] : memref<8x8xbf16, #tpu.memory_space<vmem>>, vector<8x8xbf16>
    %1 = arith.extf %0 : vector<8x8xbf16> to vector<8x8xf32>
    %c0_1 = arith.constant 0 : index
    %c0_2 = arith.constant 0 : index
    %2 = vector.load %arg2[%c0_1, %c0_2] : memref<8x5xf32, #tpu.memory_space<vmem>>, vector<8x5xf32>
    %cst = arith.constant dense<0.000000e+00> : vector<8x5xf32>
    %3 = tpu.matmul %1, %2, %cst {dimension_numbers = #tpu.dot_dimension_numbers<[1], [0], [0], [1], [0, 0, 1, 1], [], []>} : vector<8x8xf32>, vector<8x5xf32>, vector<8x5xf32> -> vector<8x5xf32>
    %c0_3 = arith.constant 0 : index
    %c0_4 = arith.constant 0 : index
    %4 = vector.load %arg3[%c0_3, %c0_4] : memref<1x5xf32, #tpu.memory_space<vmem>>, vector<1x5xf32>
    %5 = vector.broadcast %4 : vector<1x5xf32> to vector<8x5xf32>
    %6 = arith.addf %3, %5 : vector<8x5xf32>
    %cst_5 = arith.constant 0.000000e+00 : f32
    %7 = vector.broadcast %cst_5 : f32 to vector<8x5xf32>
    %8 = arith.maximumf %6, %7 : vector<8x5xf32>
    %c0_6 = arith.constant 0 : index
    %c0_7 = arith.constant 0 : index
    %9 = vector.load %arg4[%c0_6, %c0_7] : memref<8x5xf32, #tpu.memory_space<vmem>>, vector<8x5xf32>
    tpu.vector_store %arg4[%c0_6, %c0_7], %8 {strides = array<i32>} : memref<8x5xf32, #tpu.memory_space<vmem>>, vector<8x5xf32>,
    return
  }
  func.func @transform_0(%arg0: i32) -> (i32, i32) {
    %c0_i32 = arith.constant 0 : i32
    %c0_i32_0 = arith.constant 0 : i32
    return %arg0, %c0_i32 : i32, i32
  }
  func.func @transform_1(%arg0: i32) -> (i32, i32) {
    %c0_i32 = arith.constant 0 : i32
    %c0_i32_0 = arith.constant 0 : i32
    %c0_i32_1 = arith.constant 0 : i32
    return %c0_i32, %c0_i32_0 : i32, i32
  }
  func.func @transform_2(%arg0: i32) -> (i32, i32) {
    %c0_i32 = arith.constant 0 : i32
    %c0_i32_0 = arith.constant 0 : i32
    %c0_i32_1 = arith.constant 0 : i32
    return %c0_i32, %c0_i32_0 : i32, i32
  }
  func.func @transform_3(%arg0: i32) -> (i32, i32) {
    %c0_i32 = arith.constant 0 : i32
    %c0_i32_0 = arith.constant 0 : i32
    return %arg0, %c0_i32 : i32, i32
  }
}

</mosaic_0001>

<bundles_post_ra>
// kernel: tpu_custom_call.1
= control target key start
LH: loop header
LB: loop body
LE: loop exit
PB: predicated region body
PF: predicated region fallthrough
CT: control target
= control target key end

     0   :  { %8 = vsyncpa [#allocation3], 0  ;;  %s213_s0 = inlined_call_operand.hbm [shape: bf16[8,8], index: 0, kind: input, shape index: {}]   ;;  %s214_s1 = inlined_call_operand.hbm [shape: f32[8,5], index: 1, kind: input, shape index: {}]   ;;  %s215_s2 = inlined_call_operand.vmem [shape: f32[1,5], index: 2, kind: input, shape index: {}]   ;;  %s216_s3 = inlined_call_operand.hbm [shape: f32[8,5], index: 3, kind: output, shape index: {}]  }
   0x1   :  { %9 = vsyncpa [#allocation6], 0 }
   0x2   :  { %10 = vsyncpa [#allocation4], 0  ;;  %s16_s14 = sshll.u32 %s213_s0, 4  ;;  %s178_s15 = smov [#allocation2]   ;;  %s17_s14 = int_to_ptr.hbm [resolvable:$true] %s16_s14 }
   0x3   :  { %s18_s16 = sshll.u32 %s178_s15, 4  ;;  %s27_s19 = sshll.u32 %s214_s1, 4  ;;  %s19_s16 = int_to_ptr.vmem [resolvable:$true] %s18_s16  ;;  %s28_s19 = int_to_ptr.hbm [resolvable:$true] %s27_s19 }
   0x4   :  { %21 = dma.hbm_to_vmem [thread:$0]  %s17_s14, 64, %s19_s16, [#allocation3]  }
   0x5   :  { %s179_s20 = smov [#allocation5]  }
   0x6   :  { %s29_s21 = sshll.u32 %s179_s20, 4  ;;  %s30_s21 = int_to_ptr.vmem [resolvable:$true] %s29_s21 }
   0x7   :  { %32 = dma.hbm_to_vmem [thread:$0]  %s28_s19, 128, %s30_s21, [#allocation6]  }
   0x8   :  { %172 = dma.done.wait [#allocation3], 64  }
   0x9   :  { %173 = vsyncadd [#allocation3], 4294967232 }
   0xa   :  { %174 = dma.done.wait [#allocation6], 128  }
   0xb   :  { %175 = vsyncadd [#allocation6], 4294967168  ;;  %v45_v0 = vld [vmem:[#allocation5] sm:$0xff]  ;;  %v43_v1 = vld [vmem:[#allocation2] sm:$0xf]  ;;  %vm50_vm0 = vcmask 64512  }
   0xc   :  { %69 = vmatpush.msra.mxu0 %v45_v0  ;;  %v44_v2 = vunpack.c.l.bf16 %v43_v1  ;;  %v99_v3 = vld [vmem:[%s215_s2] ss:$0 sm:$0xff]  ;;  %s180_s1 = smov [#allocation7]   ;;  %s84_s26 = sshll.u32 %s216_s3, 4  ;;  %vm75_vm1 = vcmask 39936   ;;  %s85_s26 = int_to_ptr.hbm [resolvable:$true] %s84_s26 }
   0xd   :  { %s82_s23 = sshll.u32 %s180_s1, 4  ;;  %s83_s23 = int_to_ptr.vmem [resolvable:$true] %s82_s23 }
   0xe   :  { %95 = vmatmul.msk.f32.vlgmr.msra.gmra.mxu0 %vm50_vm0, %v44_v2 }
  0x8b   :  { %v71_v4 = vpop.f32.mrf.mxu0 }
  0x8c   :  { %v72_v5 = vadd.f32 %v99_v3, %v71_v4 }
  0x8e   :  { %v74_v6 = vmax.f32 %v72_v5, 0.0 }
  0x90   :  { %76 = vst.msk [vmem:[#allocation7] sm:$0xff] %vm75_vm1, %v74_v6 }
  0x91   :  { %87 = dma.vmem_to_hbm [thread:$0]  %s83_s23, 128, %s85_s26, [#allocation4]  }
  0x92   :  { %176 = dma.done.wait [#allocation4], 128  }
  0x93   :  { %177 = vsyncadd [#allocation4], 4294967168 }
  0x94   :  { %92 = vsyncpa [#allocation3], 1 }
  0x95   :  { %93 = vsyncpa [#allocation6], 1 }
  0x96   :  { %94 = vsyncpa [#allocation4], 1 }

</bundles_post_ra>
